<compile_context>
chip_gen: v7x
topology: tpu7x:2x2x1
jax: 0.10.0
libtpu: 0.0.40
codegen_flags: <defaults>
</compile_context>

<pallas_src>
import jax
import jax.numpy as jnp
from jax.experimental import pallas as pl
from jax.experimental.pallas import tpu as pltpu


def _round_up(a: int, m: int) -> int:
    return ((a + m - 1) // m) * m


def _make_encoder_kernel(tb, L, max_fs, embed, tp):
    """tb: batch tile, L: common conv positions, tp: padded feature width."""

    def kernel(x_ref, w_ref, mask_ref, fcw_ref, fcb_ref, out_ref):
        # x_ref   : (tb, s_pad, E)      f32   (sequence zero-padded to s_pad)
        # w_ref   : (max_fs, E, tp)     bf16  (all filters stacked, taps/cols zero-padded)
        # mask_ref: (tb*L, tp)          f32   (1.0 where conv position valid for that filter block)
        # fcw_ref : (tp, tp)            bf16  (fc_w.T zero-padded to 128x128)
        # fcb_ref : (1, tp)             f32
        # out_ref : (tb, tp)            f32   (lane-dense, full 128-wide stores)

        # conv = sum over taps of one big batched matmul (bf16 in, f32 acc)
        acc = jnp.zeros((tb * L, tp), jnp.float32)
        for k in range(max_fs):  # static unroll over filter taps (small)
            xk = x_ref[:, k:k + L, :].astype(jnp.bfloat16).reshape(tb * L, embed)
            acc = acc + jnp.dot(xk, w_ref[k], preferred_element_type=jnp.float32)

        # ReLU, zero out positions past each filter's valid length, max over time.
        z = jnp.maximum(acc, 0.0) * mask_ref[...]
        feat = jnp.max(z.reshape(tb, L, tp), axis=1)            # (tb, tp)

        # fc + tanh (bf16 matmul, f32 accumulate / activations)
        logits = jnp.dot(feat.astype(jnp.bfloat16), fcw_ref[...],
                         preferred_element_type=jnp.float32) + fcb_ref[...]
        out_ref[...] = jnp.tanh(logits)

    return kernel


def tdnn_encoder_forward(x, conv_weights, fc_w, fc_b, filter_sizes, num_filters):
    """x: (B, S, E).  conv_weights[i]: (num_filters, 1, E, fs_i) (PyTorch OIHW, bias=False).
    fc_w: (total, total), fc_b: (total,).  Returns (len(filters), -1, num_filters)."""
    batch, seq_len, embed = x.shape
    n_f = len(filter_sizes)
    total = n_f * num_filters
    max_fs, min_fs = max(filter_sizes), min(filter_sizes)
    L = seq_len - min_fs + 1                      # common number of conv positions computed
    tp = _round_up(total, 128)                    # lane-dense feature / output width
    tb = min(_round_up(batch, 8), 64)             # batch tile (>= one sublane group)
    b_pad = _round_up(batch, tb)
    s_pad = seq_len + (max_fs - min_fs)           # so every filter can read a max_fs window at t < L

    # ---- weight / mask prep (pure layout, done once outside the kernel) ----
    # Combined conv weight: W_all[k, e, i*nf+o] = conv_weights[i][o, 0, e, k]; taps >= fs_i zeroed.
    w_blocks = []
    for w, fs in zip(conv_weights, filter_sizes):
        wt = jnp.transpose(w[:, 0, :, :], (2, 1, 0))              # (fs, E, nf)
        wt = jnp.pad(wt, ((0, max_fs - fs), (0, 0), (0, 0)))      # zero extra taps
        w_blocks.append(wt)
    w_all = jnp.concatenate(w_blocks, axis=2)                     # (max_fs, E, total)
    w_all = jnp.pad(w_all, ((0, 0), (0, 0), (0, tp - total))).astype(jnp.bfloat16)

    # Validity mask over conv positions per filter's column block (padded cols -> 0).
    t_idx = jnp.arange(L, dtype=jnp.int32)[:, None]
    mask_cols = jnp.concatenate(
        [(t_idx < (seq_len - fs + 1)).astype(jnp.float32)
         * jnp.ones((L, num_filters), jnp.float32) for fs in filter_sizes],
        axis=1)                                                   # (L, total)
    mask = jnp.pad(mask_cols, ((0, 0), (0, tp - total)))          # (L, tp)
    mask = jnp.tile(mask, (tb, 1))                                # (tb*L, tp)

    fc_wt = jnp.pad(fc_w.T, ((0, tp - total), (0, tp - total))).astype(jnp.bfloat16)
    fc_b2 = jnp.pad(fc_b, (0, tp - total)).reshape(1, tp).astype(jnp.float32)

    x_pad = jnp.pad(x, ((0, b_pad - batch), (0, s_pad - seq_len), (0, 0)))

    kernel = _make_encoder_kernel(tb, L, max_fs, embed, tp)

    out = pl.pallas_call(
        kernel,
        out_shape=jax.ShapeDtypeStruct((b_pad, tp), jnp.float32),
        grid=(b_pad // tb,),
        in_specs=[
            pl.BlockSpec((tb, s_pad, embed), lambda b: (b, 0, 0)),   # x: tiled over batch
            pl.BlockSpec((max_fs, embed, tp), lambda b: (0, 0, 0)),  # combined conv weight
            pl.BlockSpec((tb * L, tp), lambda b: (0, 0)),            # validity mask
            pl.BlockSpec((tp, tp), lambda b: (0, 0)),                # fc weight (transposed, padded)
            pl.BlockSpec((1, tp), lambda b: (0, 0)),                 # fc bias
        ],
        out_specs=pl.BlockSpec((tb, tp), lambda b: (b, 0)),
        compiler_params=pltpu.CompilerParams(
            dimension_semantics=("parallel",),          # batch tiles are independent (megacore-friendly)
            vmem_limit_bytes=32 * 1024 * 1024,          # explicit scoped-VMEM budget (safe on v5e/v6e/v7x)
        ),
    )(x_pad, w_all, mask, fc_wt, fc_b2)

    out = out[:batch, :total]
    # PyTorch: x.view(len(filters), -1, num_filters)  (raw contiguous reshape, NOT a transpose)
    return out.reshape(n_f, -1, num_filters)


def reference_forward(x, conv_weights, fc_w, fc_b, filter_sizes, num_filters):
    """Pure-JAX (f32) reference mirroring the PyTorch forward pass exactly."""
    xin = jnp.transpose(x, (0, 2, 1))[:, None]             # (B, 1, E, S)  NCHW
    feats = []
    for w in conv_weights:                                 # w: (nf, 1, E, fs) OIHW, bias=False
        out = jax.lax.conv_general_dilated(
            xin, w, window_strides=(1, 1), padding='VALID',
            dimension_numbers=('NCHW', 'OIHW', 'NCHW'))    # (B, nf, 1, L)
        out = jax.nn.relu(out)
        pooled = jnp.max(out, axis=-1)                     # max_pool2d(kernel=(1, L))
        feats.append(pooled[:, None, :, 0])                # (B, 1, nf)
    cat = jnp.concatenate(feats, axis=1)                   # (B, n_f, nf)
    flat = cat.reshape(x.shape[0], -1)
    out = jnp.tanh(flat @ fc_w.T + fc_b)
    return out.reshape(len(filter_sizes), -1, num_filters)


if __name__ == "__main__":
    # Small, module-consistent shapes.
    batch, seq_len, embed = 2, 10, 16
    filter_sizes = [3, 4, 5]
    num_filters = 32
    total = len(filter_sizes) * num_filters

    key = jax.random.PRNGKey(0)
    keys = jax.random.split(key, 3 + len(filter_sizes))

    x = jax.random.normal(keys[0], (batch, seq_len, embed), jnp.float32)
    conv_weights = [
        0.1 * jax.random.normal(keys[1 + i], (num_filters, 1, embed, fs), jnp.float32)
        for i, fs in enumerate(filter_sizes)
    ]
    fc_w = 0.1 * jax.random.normal(keys[1 + len(filter_sizes)], (total, total), jnp.float32)
    fc_b = 0.1 * jax.random.normal(keys[2 + len(filter_sizes)], (total,), jnp.float32)

    out = tdnn_encoder_forward(x, conv_weights, fc_w, fc_b, filter_sizes, num_filters)
    out = jax.block_until_ready(out)

    ref = reference_forward(x, conv_weights, fc_w, fc_b, filter_sizes, num_filters)
    assert out.shape == (len(filter_sizes), batch, num_filters), out.shape
    max_err = float(jnp.abs(out - ref).max())
    # bf16 MXU inputs with f32 accumulation -> small rounding vs the f32 reference.
    assert jnp.allclose(out, ref, atol=2e-2, rtol=2e-2), max_err

    print("KERNEL_OK")
</pallas_src>

<mosaic_0001>
module attributes {stable_mosaic.version = 11 : i64} {
  func.func @kernel(%arg0: i32, %arg1: memref<8x12x16xf32, #tpu.memory_space<vmem>>, %arg2: memref<5x16x128xbf16, #tpu.memory_space<vmem>>, %arg3: memref<64x128xf32, #tpu.memory_space<vmem>>, %arg4: memref<128x128xbf16, #tpu.memory_space<vmem>>, %arg5: memref<1x128xf32, #tpu.memory_space<vmem>>, %arg6: memref<8x128xf32, #tpu.memory_space<vmem>>) attributes {dimension_semantics = [#tpu.dimension_semantics<parallel>], iteration_bounds = array<i64: 1>, scalar_prefetch = 0 : i64, scratch_operands = 0 : i64, tpu.core_type = #tpu.core_type<tc>, window_params = [{transform_indices = @transform_0, window_bounds = array<i64: 8, 12, 16>}, {pipeline_mode = #tpu.pipeline_mode<synchronous>, transform_indices = @transform_1, window_bounds = array<i64: 5, 16, 128>}, {pipeline_mode = #tpu.pipeline_mode<synchronous>, transform_indices = @transform_2, window_bounds = array<i64: 64, 128>}, {pipeline_mode = #tpu.pipeline_mode<synchronous>, transform_indices = @transform_3, window_bounds = array<i64: 128, 128>}, {pipeline_mode = #tpu.pipeline_mode<synchronous>, transform_indices = @transform_4, window_bounds = array<i64: 1, 128>}, {transform_indices = @transform_5, window_bounds = array<i64: 8, 128>}]} {
    %cst = arith.constant 0.000000e+00 : f32
    %0 = vector.broadcast %cst : f32 to vector<64x128xf32>
    %c0 = arith.constant 0 : index
    %c0_0 = arith.constant 0 : index
    %c0_1 = arith.constant 0 : index
    %1 = vector.load %arg1[%c0, %c0_0, %c0_1] : memref<8x12x16xf32, #tpu.memory_space<vmem>>, vector<8x8x16xf32>
    %2 = arith.truncf %1 : vector<8x8x16xf32> to vector<8x8x16xbf16>
    %3 = vector.shape_cast %2 : vector<8x8x16xbf16> to vector<64x16xbf16>
    %c0_2 = arith.constant 0 : index
    %c0_3 = arith.constant 0 : index
    %c0_4 = arith.constant 0 : index
    %4 = vector.load %arg2[%c0_2, %c0_3, %c0_4] : memref<5x16x128xbf16, #tpu.memory_space<vmem>>, vector<1x16x128xbf16>
    %5 = vector.shape_cast %4 : vector<1x16x128xbf16> to vector<16x128xbf16>
    %cst_5 = arith.constant dense<0.000000e+00> : vector<64x128xf32>
    %6 = tpu.matmul %3, %5, %cst_5 {dimension_numbers = #tpu.dot_dimension_numbers<[1], [0], [0], [1], [0, 0, 1, 1], [], []>} : vector<64x16xbf16>, vector<16x128xbf16>, vector<64x128xf32> -> vector<64x128xf32>
    %7 = arith.addf %0, %6 : vector<64x128xf32>
    %c0_6 = arith.constant 0 : index
    %c1 = arith.constant 1 : index
    %c0_7 = arith.constant 0 : index
    %8 = vector.load %arg1[%c0_6, %c1, %c0_7] : memref<8x12x16xf32, #tpu.memory_space<vmem>>, vector<8x8x16xf32>
    %9 = arith.truncf %8 : vector<8x8x16xf32> to vector<8x8x16xbf16>
    %10 = vector.shape_cast %9 : vector<8x8x16xbf16> to vector<64x16xbf16>
    %c1_8 = arith.constant 1 : index
    %c0_9 = arith.constant 0 : index
    %c0_10 = arith.constant 0 : index
    %11 = vector.load %arg2[%c1_8, %c0_9, %c0_10] : memref<5x16x128xbf16, #tpu.memory_space<vmem>>, vector<1x16x128xbf16>
    %12 = vector.shape_cast %11 : vector<1x16x128xbf16> to vector<16x128xbf16>
    %cst_11 = arith.constant dense<0.000000e+00> : vector<64x128xf32>
    %13 = tpu.matmul %10, %12, %cst_11 {dimension_numbers = #tpu.dot_dimension_numbers<[1], [0], [0], [1], [0, 0, 1, 1], [], []>} : vector<64x16xbf16>, vector<16x128xbf16>, vector<64x128xf32> -> vector<64x128xf32>
    %14 = arith.addf %7, %13 : vector<64x128xf32>
    %c0_12 = arith.constant 0 : index
    %c2 = arith.constant 2 : index
    %c0_13 = arith.constant 0 : index
    %15 = vector.load %arg1[%c0_12, %c2, %c0_13] : memref<8x12x16xf32, #tpu.memory_space<vmem>>, vector<8x8x16xf32>
    %16 = arith.truncf %15 : vector<8x8x16xf32> to vector<8x8x16xbf16>
    %17 = vector.shape_cast %16 : vector<8x8x16xbf16> to vector<64x16xbf16>
    %c2_14 = arith.constant 2 : index
    %c0_15 = arith.constant 0 : index
    %c0_16 = arith.constant 0 : index
    %18 = vector.load %arg2[%c2_14, %c0_15, %c0_16] : memref<5x16x128xbf16, #tpu.memory_space<vmem>>, vector<1x16x128xbf16>
    %19 = vector.shape_cast %18 : vector<1x16x128xbf16> to vector<16x128xbf16>
    %cst_17 = arith.constant dense<0.000000e+00> : vector<64x128xf32>
    %20 = tpu.matmul %17, %19, %cst_17 {dimension_numbers = #tpu.dot_dimension_numbers<[1], [0], [0], [1], [0, 0, 1, 1], [], []>} : vector<64x16xbf16>, vector<16x128xbf16>, vector<64x128xf32> -> vector<64x128xf32>
    %21 = arith.addf %14, %20 : vector<64x128xf32>
    %c0_18 = arith.constant 0 : index
    %c3 = arith.constant 3 : index
    %c0_19 = arith.constant 0 : index
    %22 = vector.load %arg1[%c0_18, %c3, %c0_19] : memref<8x12x16xf32, #tpu.memory_space<vmem>>, vector<8x8x16xf32>
    %23 = arith.truncf %22 : vector<8x8x16xf32> to vector<8x8x16xbf16>
    %24 = vector.shape_cast %23 : vector<8x8x16xbf16> to vector<64x16xbf16>
    %c3_20 = arith.constant 3 : index
    %c0_21 = arith.constant 0 : index
    %c0_22 = arith.constant 0 : index
    %25 = vector.load %arg2[%c3_20, %c0_21, %c0_22] : memref<5x16x128xbf16, #tpu.memory_space<vmem>>, vector<1x16x128xbf16>
    %26 = vector.shape_cast %25 : vector<1x16x128xbf16> to vector<16x128xbf16>
    %cst_23 = arith.constant dense<0.000000e+00> : vector<64x128xf32>
    %27 = tpu.matmul %24, %26, %cst_23 {dimension_numbers = #tpu.dot_dimension_numbers<[1], [0], [0], [1], [0, 0, 1, 1], [], []>} : vector<64x16xbf16>, vector<16x128xbf16>, vector<64x128xf32> -> vector<64x128xf32>
    %28 = arith.addf %21, %27 : vector<64x128xf32>
    %c0_24 = arith.constant 0 : index
    %c4 = arith.constant 4 : index
    %c0_25 = arith.constant 0 : index
    %29 = vector.load %arg1[%c0_24, %c4, %c0_25] : memref<8x12x16xf32, #tpu.memory_space<vmem>>, vector<8x8x16xf32>
    %30 = arith.truncf %29 : vector<8x8x16xf32> to vector<8x8x16xbf16>
    %31 = vector.shape_cast %30 : vector<8x8x16xbf16> to vector<64x16xbf16>
    %c4_26 = arith.constant 4 : index
    %c0_27 = arith.constant 0 : index
    %c0_28 = arith.constant 0 : index
    %32 = vector.load %arg2[%c4_26, %c0_27, %c0_28] : memref<5x16x128xbf16, #tpu.memory_space<vmem>>, vector<1x16x128xbf16>
    %33 = vector.shape_cast %32 : vector<1x16x128xbf16> to vector<16x128xbf16>
    %cst_29 = arith.constant dense<0.000000e+00> : vector<64x128xf32>
    %34 = tpu.matmul %31, %33, %cst_29 {dimension_numbers = #tpu.dot_dimension_numbers<[1], [0], [0], [1], [0, 0, 1, 1], [], []>} : vector<64x16xbf16>, vector<16x128xbf16>, vector<64x128xf32> -> vector<64x128xf32>
    %35 = arith.addf %28, %34 : vector<64x128xf32>
    %cst_30 = arith.constant 0.000000e+00 : f32
    %36 = vector.broadcast %cst_30 : f32 to vector<64x128xf32>
    %37 = arith.maximumf %35, %36 : vector<64x128xf32>
    %c0_31 = arith.constant 0 : index
    %c0_32 = arith.constant 0 : index
    %38 = vector.load %arg3[%c0_31, %c0_32] : memref<64x128xf32, #tpu.memory_space<vmem>>, vector<64x128xf32>
    %39 = arith.mulf %37, %38 : vector<64x128xf32>
    %40 = vector.shape_cast %39 : vector<64x128xf32> to vector<8x8x128xf32>
    %cst_33 = arith.constant dense<0xFF800000> : vector<8x128xf32>
    %41 = vector.multi_reduction <maximumf>, %40, %cst_33 [1] : vector<8x8x128xf32> to vector<8x128xf32>
    %42 = arith.truncf %41 : vector<8x128xf32> to vector<8x128xbf16>
    %c0_34 = arith.constant 0 : index
    %c0_35 = arith.constant 0 : index
    %43 = vector.load %arg4[%c0_34, %c0_35] : memref<128x128xbf16, #tpu.memory_space<vmem>>, vector<128x128xbf16>
    %cst_36 = arith.constant dense<0.000000e+00> : vector<8x128xf32>
    %44 = tpu.matmul %42, %43, %cst_36 {dimension_numbers = #tpu.dot_dimension_numbers<[1], [0], [0], [1], [0, 0, 1, 1], [], []>} : vector<8x128xbf16>, vector<128x128xbf16>, vector<8x128xf32> -> vector<8x128xf32>
    %c0_37 = arith.constant 0 : index
    %c0_38 = arith.constant 0 : index
    %45 = vector.load %arg5[%c0_37, %c0_38] : memref<1x128xf32, #tpu.memory_space<vmem>>, vector<1x128xf32>
    %46 = vector.broadcast %45 : vector<1x128xf32> to vector<8x128xf32>
    %47 = arith.addf %44, %46 : vector<8x128xf32>
    %48 = math.tanh %47 : vector<8x128xf32>
    %c0_39 = arith.constant 0 : index
    %c0_40 = arith.constant 0 : index
    %49 = vector.load %arg6[%c0_39, %c0_40] : memref<8x128xf32, #tpu.memory_space<vmem>>, vector<8x128xf32>
    tpu.vector_store %arg6[%c0_39, %c0_40], %48 {strides = array<i32>} : memref<8x128xf32, #tpu.memory_space<vmem>>, vector<8x128xf32>,
    return
  }
  func.func @transform_0(%arg0: i32) -> (i32, i32, i32) {
    %c0_i32 = arith.constant 0 : i32
    %c0_i32_0 = arith.constant 0 : i32
    %c0_i32_1 = arith.constant 0 : i32
    return %arg0, %c0_i32, %c0_i32_0 : i32, i32, i32
  }
  func.func @transform_1(%arg0: i32) -> (i32, i32, i32) {
    %c0_i32 = arith.constant 0 : i32
    %c0_i32_0 = arith.constant 0 : i32
    %c0_i32_1 = arith.constant 0 : i32
    %c0_i32_2 = arith.constant 0 : i32
    return %c0_i32, %c0_i32_0, %c0_i32_1 : i32, i32, i32
  }
  func.func @transform_2(%arg0: i32) -> (i32, i32) {
    %c0_i32 = arith.constant 0 : i32
    %c0_i32_0 = arith.constant 0 : i32
    %c0_i32_1 = arith.constant 0 : i32
    return %c0_i32, %c0_i32_0 : i32, i32
  }
  func.func @transform_3(%arg0: i32) -> (i32, i32) {
    %c0_i32 = arith.constant 0 : i32
    %c0_i32_0 = arith.constant 0 : i32
    %c0_i32_1 = arith.constant 0 : i32
    return %c0_i32, %c0_i32_0 : i32, i32
  }
  func.func @transform_4(%arg0: i32) -> (i32, i32) {
    %c0_i32 = arith.constant 0 : i32
    %c0_i32_0 = arith.constant 0 : i32
    %c0_i32_1 = arith.constant 0 : i32
    return %c0_i32, %c0_i32_0 : i32, i32
  }
  func.func @transform_5(%arg0: i32) -> (i32, i32) {
    %c0_i32 = arith.constant 0 : i32
    %c0_i32_0 = arith.constant 0 : i32
    return %arg0, %c0_i32 : i32, i32
  }
}

</mosaic_0001>

<bundles_post_ra>
// kernel: tpu_custom_call.1
= control target key start
LH: loop header
LB: loop body
LE: loop exit
PB: predicated region body
PF: predicated region fallthrough
CT: control target
= control target key end

     0   :  { %vm85_vm0 = vcmask 130048   ;;  %s1406_s0 = inlined_call_operand.vmem [shape: f32[8,12,16], index: 0, kind: input, shape index: {}]   ;;  %s1407_s1 = inlined_call_operand.vmem [shape: bf16[5,16,128], index: 1, kind: input, shape index: {}]   ;;  %s1408_s2 = inlined_call_operand.vmem [shape: f32[64,128], index: 2, kind: input, shape index: {}]   ;;  %s1409_s3 = inlined_call_operand.vmem [shape: bf16[128,128], index: 3, kind: input, shape index: {}]   ;;  %s1410_s4 = inlined_call_operand.vmem [shape: f32[1,128], index: 4, kind: input, shape index: {}]   ;;  %s1411_s5 = inlined_call_operand.hbm [shape: f32[8,128], index: 5, kind: output, shape index: {}]  }
   0x1   :  { %v1116_v0 = vld [vmem:[%s1407_s1 + $0x8] sm:$0xff]   ;;  %v1117_v1 = vld [vmem:[%s1407_s1 + $0x10] sm:$0xff]   ;;  %v1118_v14 = vld [vmem:[%s1407_s1 + $0x18] sm:$0xff]  }
   0x2   :  { %1011 = vmatprep.subr.bf16.mxu1 %v1116_v0  ;;  %v40_v2 = vld [vmem:[%s1406_s0 + $0x1] sm:$0xff]  ;;  %v41_v3 = vld [vmem:[%s1406_s0 + $0x11] sm:$0xff]  ;;  %1031 = vmatprep.subr.bf16.mxu0 %v1117_v1 }
   0x3   :  { %v266_v4 = vld [vmem:[%s1406_s0 + $0x2] sm:$0xff]  ;;  %1012 = vmatpush3.bf16.msra.mxu1 %v1116_v0  ;;  %v957_v5 = vpack.c.bf16 %v41_v3, %v40_v2  ;;  %v267_v6 = vld [vmem:[%s1406_s0 + $0x12] sm:$0xff]  ;;  %1032 = vmatpush3.bf16.msra.mxu0 %v1117_v1 }
   0x4   :  { %v42_v7 = vld [vmem:[%s1406_s0 + $0x21] sm:$0xff]  ;;  %v43_v8 = vld [vmem:[%s1406_s0 + $0x31] sm:$0xff]  ;;  %v965_v9 = vpack.c.bf16 %v267_v6, %v266_v4  ;;  %1041 = vmatprep.subr.bf16.mxu0 %v1118_v14 }
   0x5   :  { %v958_v10 = vpack.c.bf16 %v43_v8, %v42_v7  ;;  %v268_v11 = vld [vmem:[%s1406_s0 + $0x22] sm:$0xff]  ;;  %v269_v12 = vld [vmem:[%s1406_s0 + $0x32] sm:$0xff]  ;;  %1013 = vmatprep.mubr.msk.bf16.mxu1 %vm85_vm0, %v957_v5 }
   0x6   :  { %v966_v13 = vpack.c.bf16 %v269_v12, %v268_v11  ;;  %v44_v15 = vld [vmem:[%s1406_s0 + $0x41] sm:$0xff]  ;;  %1033 = vmatprep.mubr.msk.bf16.mxu0 %vm85_vm0, %v965_v9  ;;  %v45_v16 = vld [vmem:[%s1406_s0 + $0x51] sm:$0xff] }
   0x7   :  { %1014 = vmatmul.mubr.msk.bf16.vlgmr.msra.gmra.mrb[0].mxu1 %vm85_vm0, %v958_v10  ;;  %v270_v17 = vld [vmem:[%s1406_s0 + $0x42] sm:$0xff]  ;;  %v271_v18 = vld [vmem:[%s1406_s0 + $0x52] sm:$0xff]  ;;  %v959_v19 = vpack.c.bf16 %v45_v16, %v44_v15 }
   0x8   :  { %1034 = vmatmul.mubr.msk.bf16.vlgmr.msra.gmra.mrb[0].mxu0 %vm85_vm0, %v966_v13  ;;  %v967_v20 = vpack.c.bf16 %v271_v18, %v270_v17  ;;  %v46_v21 = vld [vmem:[%s1406_s0 + $0x61] sm:$0xff]  ;;  %v47_v22 = vld [vmem:[%s1406_s0 + $0x71] sm:$0xff] }
   0x9   :  { %v272_v23 = vld [vmem:[%s1406_s0 + $0x62] sm:$0xff]  ;;  %1042 = vmatpush3.bf16.msra.mxu0 %v1118_v14  ;;  %v273_v24 = vld [vmem:[%s1406_s0 + $0x72] sm:$0xff]  ;;  %1017 = vmatprep.mubr.msk.bf16.mxu1 %vm85_vm0, %v959_v19  ;;  %v960_v28 = vpack.c.bf16 %v47_v22, %v46_v21 }
   0xa   :  { %1037 = vmatprep.mubr.msk.bf16.mxu0 %vm85_vm0, %v967_v20  ;;  %v1119_v25 = vld [vmem:[%s1407_s1] sm:$0xff]   ;;  %v23_v27 = vld [vmem:[%s1406_s0 + $0x10] sm:$0xff]  ;;  %v968_v31 = vpack.c.bf16 %v273_v24, %v272_v23 }
   0xb   :  { %v22_v26 = vld [vmem:[%s1406_s0] sm:$0xff]  ;;  %v397_v30 = vld [vmem:[%s1406_s0 + $0x13] sm:$0xff]  ;;  %1021 = vmatprep.subr.bf16.mxu1 %v1119_v25 }
   0xc   :  { %v396_v29 = vld [vmem:[%s1406_s0 + $0x3] sm:$0xff]  ;;  %v961_v32 = vpack.c.bf16 %v23_v27, %v22_v26  ;;  %1022 = vmatpush3.bf16.msra.mxu1 %v1119_v25  ;;  %v25_v36 = vld [vmem:[%s1406_s0 + $0x30] sm:$0xff] }
   0xd   :  { %v969_v33 = vpack.c.bf16 %v397_v30, %v396_v29  ;;  %v1120_v34 = vld [vmem:[%s1407_s1 + $0x20] sm:$0xff]   ;;  %v399_v38 = vld [vmem:[%s1406_s0 + $0x33] sm:$0xff] }
   0xe   :  { %1051 = vmatprep.subr.bf16.mxu0 %v1120_v34  ;;  %v24_v35 = vld [vmem:[%s1406_s0 + $0x20] sm:$0xff]  ;;  %v27_v40 = vld [vmem:[%s1406_s0 + $0x50] sm:$0xff] }
   0xf   :  { %1018 = vmatmul.mubr.msk.bf16.gmra.mrb[4].mxu1 %vm85_vm0, %v960_v28  ;;  %v398_v37 = vld [vmem:[%s1406_s0 + $0x23] sm:$0xff]  ;;  %v401_v42 = vld [vmem:[%s1406_s0 + $0x53] sm:$0xff]  ;;  %v962_v43 = vpack.c.bf16 %v25_v36, %v24_v35 }
  0x10   :  { %1038 = vmatmul.mubr.msk.bf16.gmra.mrb[4].mxu0 %vm85_vm0, %v968_v31  ;;  %1023 = vmatprep.mubr.msk.bf16.mxu1 %vm85_vm0, %v961_v32  ;;  %v26_v39 = vld [vmem:[%s1406_s0 + $0x40] sm:$0xff]  ;;  %v970_v44 = vpack.c.bf16 %v399_v38, %v398_v37  ;;  %v29_v48 = vld [vmem:[%s1406_s0 + $0x70] sm:$0xff] }
  0x11   :  { %1043 = vmatprep.mubr.msk.bf16.mxu0 %vm85_vm0, %v969_v33  ;;  %v400_v41 = vld [vmem:[%s1406_s0 + $0x43] sm:$0xff]  ;;  %v963_v45 = vpack.c.bf16 %v27_v40, %v26_v39 }
  0x12   :  { %v971_v46 = vpack.c.bf16 %v401_v42, %v400_v41  ;;  %v28_v47 = vld [vmem:[%s1406_s0 + $0x60] sm:$0xff] }
  0x17   :  { %1024 = vmatmul.mubr.msk.bf16.vlgmr.msra.gmra.mrb[0].mxu1 %vm85_vm0, %v962_v43 }
  0x18   :  { %1044 = vmatmul.mubr.msk.bf16.vlgmr.msra.gmra.mrb[0].mxu0 %vm85_vm0, %v970_v44  ;;  %1027 = vmatprep.mubr.msk.bf16.mxu1 %vm85_vm0, %v963_v45 }
  0x19   :  { %10 = vsyncpa [#allocation3], 0  ;;  %1052 = vmatpush3.bf16.msra.mxu0 %v1120_v34  ;;  %1047 = vmatprep.mubr.msk.bf16.mxu0 %vm85_vm0, %v971_v46  ;;  %v402_v49 = vld [vmem:[%s1406_s0 + $0x63] sm:$0xff]  ;;  %v403_v50 = vld [vmem:[%s1406_s0 + $0x73] sm:$0xff]  ;;  %v964_v53 = vpack.c.bf16 %v29_v48, %v28_v47  ;;  %v1155_v2 = vmov 0.0   ;;  %vm1156_vm1 = vmmov 0  }
  0x1a   :  { %v526_v51 = vld [vmem:[%s1406_s0 + $0x4] sm:$0xff]  ;;  %v527_v52 = vld [vmem:[%s1406_s0 + $0x14] sm:$0xff]  ;;  %v972_v54 = vpack.c.bf16 %v403_v50, %v402_v49  ;;  %1061 = vmatprep.subr.bf16.mxu1 %v1155_v2  ;;  %vm775_vm2 = vcmask 1041409   ;;  %vm777_vm3 = vcmask 1042434   ;;  %vm779_vm4 = vcmask 1043459   ;;  %s1157_s11 = smov [#allocation2]  }
  0x1b   :  { %v973_v55 = vpack.c.bf16 %v527_v52, %v526_v51  ;;  %v528_v56 = vld [vmem:[%s1406_s0 + $0x24] sm:$0xff]  ;;  %v529_v57 = vld [vmem:[%s1406_s0 + $0x34] sm:$0xff]  ;;  %vm781_vm5 = vcmask 1044484   ;;  %vm783_vm6 = vcmask 1045509   ;;  %vm785_vm7 = vcmask 1046534  }
  0x1c   :  { %v530_v58 = vld [vmem:[%s1406_s0 + $0x44] sm:$0xff]  ;;  %v531_v59 = vld [vmem:[%s1406_s0 + $0x54] sm:$0xff]  ;;  %v974_v60 = vpack.c.bf16 %v529_v57, %v528_v56  ;;  %vm787_vm8 = vcmask 1047559  }
  0x1d   :  { %v975_v61 = vpack.c.bf16 %v531_v59, %v530_v58  ;;  %v532_v62 = vld [vmem:[%s1406_s0 + $0x64] sm:$0xff]  ;;  %v533_v63 = vld [vmem:[%s1406_s0 + $0x74] sm:$0xff]  ;;  %s887_s0 = sshll.u32 %s1157_s11, 4  ;;  %s888_s0 = int_to_ptr.vmem [resolvable:$true] %s887_s0 }
  0x1e   :  { %v976_v0 = vpack.c.bf16 %v533_v63, %v532_v62  ;;  %v1121_v1 = vld [vmem:[%s1409_s3] sm:$0xff]   ;;  %v1122_v3 = vld [vmem:[%s1409_s3 + $0x8] sm:$0xff]   ;;  %v1123_v4 = vld [vmem:[%s1409_s3 + $0x10] sm:$0xff]   ;;  %s1131_s12 = scalar_lea.vmem %s888_s0, 128  ;;  %p1136_p1 = scmp.lt.s32.totalorder %s888_s0, %s888_s0 }
  0x1f   :  { %1028 = vmatmul.mubr.msk.bf16.gmra.mrb[4].mxu1 %vm85_vm0, %v964_v53  ;;  %v1124_v5 = vld [vmem:[%s1409_s3 + $0x18] sm:$0xff]   ;;  %v1125_v6 = vld [vmem:[%s1409_s3 + $0x20] sm:$0xff]   ;;  %v1126_v7 = vld [vmem:[%s1409_s3 + $0x28] sm:$0xff]   ;;  %p1132_p0 = scmp.ne.s32.totalorder %s888_s0, %s1131_s12  ;;  %p1137_p2 = scmp.lt.s32.totalorder %s1131_s12, %s1131_s12 }
  0x20   :  { %1048 = vmatmul.mubr.msk.bf16.gmra.mrb[4].mxu0 %vm85_vm0, %v972_v54  ;;  %1062 = vmatpush3.bf16.msra.mxu1 %v1121_v1  ;;  %v1127_v8 = vld [vmem:[%s1409_s3 + $0x30] sm:$0xff]   ;;  %v1128_v9 = vld [vmem:[%s1409_s3 + $0x38] sm:$0xff]   ;;  %v664_v25 = vld [vmem:[%s1408_s2] sm:$0xff] }
  0x21   :  { %1053 = vmatprep.mubr.msk.bf16.mxu0 %vm85_vm0, %v973_v55  ;;  %1063 = vmatprep.subr.bf16.mxu1 %v1155_v2  ;;  %v666_v21 = vld [vmem:[%s1408_s2 + $0x10] sm:$0xff]  ;;  %v667_v29 = vld [vmem:[%s1408_s2 + $0x18] sm:$0xff]  ;;  %v665_v33 = vld [vmem:[%s1408_s2 + $0x8] sm:$0xff]  ;;  %p1138_p3 = por %p1137_p2, %p1136_p1 }
  0x22   :  { %1077 = vmatprep.mubr.msk.bf16.mxu1 %vm1156_vm1, %v1155_v2  ;;  %v670_v47 = vld [vmem:[%s1408_s2 + $0x30] sm:$0xff]  ;;  %v668_v53 = vld [vmem:[%s1408_s2 + $0x20] sm:$0xff]  ;;  %v671_v59 = vld [vmem:[%s1408_s2 + $0x38] sm:$0xff] }
  0x23   :  { %v669_v1 = vld [vmem:[%s1408_s2 + $0x28] sm:$0xff]  ;;  %p1139_p4 = pnand %p1138_p3, %p1132_p0 }
  0x24   :  { %1064 = vmatpush3.bf16.msra.mxu1 %v1122_v3 }
  0x25   :  { %1065 = vmatprep.subr.bf16.mxu1 %v1155_v2 }
  0x28   :  { %1054 = vmatmul.mubr.msk.bf16.vlgmr.msra.gmra.mrb[0].mxu0 %vm85_vm0, %v974_v60  ;;  %1066 = vmatpush3.bf16.msra.mxu1 %v1123_v4 }
  0x29   :  { %1057 = vmatprep.mubr.msk.bf16.mxu0 %vm85_vm0, %v975_v61  ;;  %1067 = vmatprep.subr.bf16.mxu1 %v1155_v2 }
  0x2c   :  { %1068 = vmatpush3.bf16.msra.mxu1 %v1124_v5 }
  0x2d   :  { %1069 = vmatprep.subr.bf16.mxu1 %v1155_v2 }
  0x30   :  { %1058 = vmatmul.mubr.msk.bf16.gmra.mrb[4].mxu0 %vm85_vm0, %v976_v0  ;;  %1070 = vmatpush3.bf16.msra.mxu1 %v1125_v6 }
  0x31   :  { %1071 = vmatprep.subr.bf16.mxu1 %v1155_v2 }
  0x34   :  { %1072 = vmatpush3.bf16.msra.mxu1 %v1126_v7 }
  0x35   :  { %1073 = vmatprep.subr.bf16.mxu1 %v1155_v2 }
  0x38   :  { %1074 = vmatpush3.bf16.msra.mxu1 %v1127_v8 }
  0x39   :  { %1075 = vmatprep.subr.bf16.mxu1 %v1155_v2 }
  0x3c   :  { %1076 = vmatpush3.bf16.msra.mxu1 %v1128_v9 }
  0xea   :  { %v1025_v10 = vpop.f32.mrb[0].mxu1 }
  0xeb   :  { %v235_v11 = vpop.f32.mrb[1].mxu1 }
  0xec   :  { %v1026_v12 = vpop.f32.mrb[2].mxu1 }
  0xed   :  { %v238_v13 = vpop.f32.mrb[3].mxu1 }
  0xf2   :  { %v1029_v14 = vpop.f32.mrb[4].mxu1 }
  0xf3   :  { %v251_v15 = vpop.f32.mrb[5].mxu1 }
  0xf4   :  { %v1030_v16 = vpop.f32.mrb[6].mxu1 }
  0xf5   :  { %v254_v17 = vpop.f32.mrb[7].mxu1 }
  0xfb   :  { %v1055_v18 = vpop.f32.mrb[0].mxu0 }
  0xfc   :  { %v1081_v19 = vadd.f32 %v1055_v18, %v1025_v10  ;;  %v617_v20 = vpop.f32.mrb[1].mxu0 }
  0xfd   :  { %v1082_v22 = vadd.f32 %v617_v20, %v235_v11  ;;  %v1056_v23 = vpop.f32.mrb[2].mxu0 }
  0xfe   :  { %v658_v24 = vmax.f32 %v1081_v19, 0.0  ;;  %v1083_v26 = vadd.f32 %v1056_v23, %v1026_v12  ;;  %v620_v27 = vpop.f32.mrb[3].mxu0 }
  0xff   :  { %v656_v28 = vmax.f32 %v1082_v22, 0.0  ;;  %v1084_v30 = vadd.f32 %v620_v27, %v238_v13 }
 0x100   :  { %v674_v31 = vmul.f32 %v666_v21, %v658_v24  ;;  %v659_v32 = vmax.f32 %v1083_v26, 0.0 }
 0x101   :  { %v672_v34 = vmul.f32 %v664_v25, %v656_v28  ;;  %v657_v35 = vmax.f32 %v1084_v30, 0.0 }
 0x102   :  { %v692_v36 = vrot.slane %v674_v31, 4  ;;  %v675_v37 = vmul.f32 %v667_v29, %v659_v32 }
 0x103   :  { %v680_v38 = vrot.slane %v672_v34, 4  ;;  %v673_v39 = vmul.f32 %v665_v33, %v657_v35  ;;  %v1059_v40 = vpop.f32.mrb[4].mxu0 }
 0x104   :  { %v693_v41 = vmax.f32 %v674_v31, %v692_v36  ;;  %v698_v42 = vrot.slane %v675_v37, 4  ;;  %v1085_v43 = vadd.f32 %v1059_v40, %v1029_v14  ;;  %v633_v44 = vpop.f32.mrb[5].mxu0 }
 0x105   :  { %v681_v45 = vmax.f32 %v672_v34, %v680_v38  ;;  %v686_v46 = vrot.slane %v673_v39, 4  ;;  %v1086_v48 = vadd.f32 %v633_v44, %v251_v15  ;;  %v1060_v49 = vpop.f32.mrb[6].mxu0 }
 0x106   :  { %v694_v50 = vrot.slane %v693_v41, 2  ;;  %v699_v51 = vmax.f32 %v675_v37, %v698_v42  ;;  %v662_v52 = vmax.f32 %v1085_v43, 0.0  ;;  %v1087_v54 = vadd.f32 %v1060_v49, %v1030_v16  ;;  %v636_v55 = vpop.f32.mrb[7].mxu0 }
 0x107   :  { %v682_v56 = vrot.slane %v681_v45, 2  ;;  %v687_v57 = vmax.f32 %v673_v39, %v686_v46  ;;  %v660_v58 = vmax.f32 %v1086_v48, 0.0  ;;  %v1088_v60 = vadd.f32 %v636_v55, %v254_v17 }
 0x108   :  { %v695_v61 = vmax.f32 %v693_v41, %v694_v50  ;;  %v700_v62 = vrot.slane %v699_v51, 2  ;;  %v678_v63 = vmul.f32 %v670_v47, %v662_v52  ;;  %v663_v0 = vmax.f32 %v1087_v54, 0.0 }
 0x109   :  { %v683_v2 = vmax.f32 %v681_v45, %v682_v56  ;;  %v688_v3 = vrot.slane %v687_v57, 2  ;;  %v676_v4 = vmul.f32 %v668_v53, %v660_v58  ;;  %v661_v5 = vmax.f32 %v1088_v60, 0.0 }
 0x10a   :  { %v696_v6 = vrot.slane %v695_v61, 1  ;;  %v701_v7 = vmax.f32 %v699_v51, %v700_v62  ;;  %v716_v8 = vrot.slane %v678_v63, 4  ;;  %v679_v9 = vmul.f32 %v671_v59, %v663_v0 }
 0x10b   :  { %v684_v10 = vrot.slane %v683_v2, 1  ;;  %v689_v11 = vmax.f32 %v687_v57, %v688_v3  ;;  %v704_v12 = vrot.slane %v676_v4, 4  ;;  %v677_v13 = vmul.f32 %v669_v1, %v661_v5 }
 0x10c   :  { %v697_v14 = vmax.f32 %v695_v61, %v696_v6  ;;  %v702_v15 = vrot.slane %v701_v7, 1  ;;  %v717_v16 = vmax.f32 %v678_v63, %v716_v8  ;;  %v722_v17 = vrot.slane %v679_v9, 4 }
 0x10d   :  { %v685_v18 = vmax.f32 %v683_v2, %v684_v10  ;;  %v690_v19 = vrot.slane %v689_v11, 1  ;;  %v705_v20 = vmax.f32 %v676_v4, %v704_v12  ;;  %v710_v21 = vrot.slane %v677_v13, 4  ;;  %v948_v2 = vld [vmem:[%s1410_s4] ss:$0 sm:$0xff] }
 0x10e   :  { %v703_v22 = vmax.f32 %v701_v7, %v702_v15  ;;  %v718_v23 = vrot.slane %v717_v16, 2  ;;  %v723_v24 = vmax.f32 %v679_v9, %v722_v17  ;;  %v730_v29 = vpack.c.bf16 %v697_v14, %v697_v14 }
 0x10f   :  { %v728_v25 = vpack.c.bf16 %v685_v18, %v685_v18  ;;  %v691_v26 = vmax.f32 %v689_v11, %v690_v19  ;;  %v706_v27 = vrot.slane %v705_v20, 2  ;;  %v711_v28 = vmax.f32 %v677_v13, %v710_v21 }
 0x110   :  { %v719_v30 = vmax.f32 %v717_v16, %v718_v23  ;;  %v724_v31 = vrot.slane %v723_v24, 2  ;;  %v731_v32 = vpack.c.bf16 %v703_v22, %v703_v22  ;;  %v769_v42 = vunpack.c.l.b16 %v730_v29 }
 0x111   :  { %v729_v33 = vpack.c.bf16 %v691_v26, %v691_v26  ;;  %v707_v34 = vmax.f32 %v705_v20, %v706_v27  ;;  %v712_v35 = vrot.slane %v711_v28, 2  ;;  %v767_v38 = vunpack.c.l.b16 %v728_v25 }
 0x112   :  { %v720_v36 = vrot.slane %v719_v30, 1  ;;  %v725_v37 = vmax.f32 %v723_v24, %v724_v31  ;;  %v770_v45 = vunpack.c.l.b16 %v731_v32 }
 0x113   :  { %v768_v39 = vunpack.c.l.b16 %v729_v33  ;;  %v708_v40 = vrot.slane %v707_v34, 1  ;;  %v713_v41 = vmax.f32 %v711_v28, %v712_v35 }
 0x114   :  { %v721_v43 = vmax.f32 %v719_v30, %v720_v36  ;;  %v726_v44 = vrot.slane %v725_v37, 1 }
 0x115   :  { %v776_v46 = vsel %vm775_vm2, %v768_v39, %v767_v38  ;;  %v709_v47 = vmax.f32 %v707_v34, %v708_v40  ;;  %v714_v48 = vrot.slane %v713_v41, 1 }
 0x116   :  { %v778_v49 = vsel %vm777_vm3, %v769_v42, %v776_v46  ;;  %v727_v50 = vmax.f32 %v725_v37, %v726_v44  ;;  %v734_v54 = vpack.c.bf16 %v721_v43, %v721_v43 }
 0x117   :  { %v732_v51 = vpack.c.bf16 %v709_v47, %v709_v47  ;;  %v780_v52 = vsel %vm779_vm4, %v770_v45, %v778_v49  ;;  %v715_v53 = vmax.f32 %v713_v41, %v714_v48 }
 0x118   :  { %v735_v56 = vpack.c.bf16 %v727_v50, %v727_v50  ;;  %v773_v60 = vunpack.c.l.b16 %v734_v54 }
 0x119   :  { %v771_v55 = vunpack.c.l.b16 %v732_v51  ;;  %v733_v57 = vpack.c.bf16 %v715_v53, %v715_v53 }
 0x11a   :  { %v774_v61 = vunpack.c.l.b16 %v735_v56 }
 0x11b   :  { %v782_v58 = vsel %vm781_vm5, %v771_v55, %v780_v52  ;;  %v772_v59 = vunpack.c.l.b16 %v733_v57 }
 0x11d   :  { %v784_v62 = vsel %vm783_vm6, %v772_v59, %v782_v58 }
 0x11e   :  { %v786_v63 = vsel %vm785_vm7, %v773_v60, %v784_v62 }
 0x11f   :  { %v788_v0 = vsel %vm787_vm8, %v774_v61, %v786_v63 }
 0x120   :  { %v789_v1 = vpack.c.b16 %v788_v0, %v788_v0 }
 0x122   :  { %1078 = vmatmul.mubr.bf16.vlgmr.msra.gmra.mrb[8].mxu1 %v789_v1 }
 0x1f5   :  { %v873_v3 = vpop.f32.mrb[8].mxu1 }
 0x1f6   :  { %v874_v4 = vadd.f32 %v948_v2, %v873_v3  ;;  %v1079_v5 = vpop.f32.mrb[9].mxu1 }
 0x1f7   :  { %v876_v6 = vpop.f32.mrb[10].mxu1 }
 0x1f8   :  { %1129 = vtanh.f32 %v874_v4  ;;  %v1080_v7 = vpop.f32.mrb[11].mxu1 }
 0x202   :  { %v1130_v8 = vpop.eup %1129 }
 0x203   :  { %880 = vst [vmem:[#allocation2] sm:$0xff] %v1130_v8 }
 0x204   :  { %1142 = shalt.err (!%p1139_p4)
}
 0x205   :  { %s1143_s14 = scalar_lea.hbm %s1411_s5, 128 }
 0x206   :  { %p1144_p5 = scmp.ne.s32.totalorder %s1411_s5, %s1143_s14  ;;  %p1147_p6 = scmp.lt.u32.totalorder %s1143_s14, %s1411_s5 }
 0x208   :  { %p1149_p7 = pnand %p1147_p6, %p1144_p5 }
 0x20a   :  { %1152 = shalt.err (!%p1149_p7)
}
 0x20b   :  { %890 = dma.vmem_to_hbm [thread:$0]  %s888_s0, 128, %s1411_s5, [#allocation3]  }
 0x20c   :  { %1153 = dma.done.wait [#allocation3], 128  }
 0x20d   :  { %1154 = vsyncadd [#allocation3], 4294967168 }
 0x20e   :  { %894 = vsyncpa [#allocation3], 1 }

</bundles_post_ra>
